<compile_context>
chip_gen: v6e
topology: v6e:2x2x1
jax: 0.10.0
libtpu: 0.0.40
codegen_flags: <defaults>
</compile_context>

<pallas_src>
import functools

import jax
import jax.numpy as jnp
from jax import lax
from jax.experimental import pallas as pl
from jax.experimental.pallas import tpu as pltpu


def _extend_embedding_kernel(w_ref, t_ref, i_ref, tab_ref, out_ref):
    # w_ref / t_ref / i_ref : (TILE, 1) int32, already offset into combined-table rows
    # tab_ref               : (K_pad, N_pad) float32 (combined block-diagonal table)
    # out_ref               : (TILE, N_pad) float32
    T = out_ref.shape[0]
    K_pad = tab_ref.shape[0]

    w = w_ref[...]                                   # (T, 1) rows [0, V)
    t = t_ref[...]                                   # (T, 1) rows [V, V+TV)
    ii = i_ref[...]                                  # (T, 1) rows [V+TV, V+TV+2)

    # One one-hot with three disjoint ones per row (ranges never collide -> OR is exact).
    col = lax.broadcasted_iota(jnp.int32, (T, K_pad), 1)
    one_hot = ((col == w) | (col == t) | (col == ii)).astype(tab_ref.dtype)

    # Single MXU matmul does word-gather + tag-gather + is_in flag + concat at once.
    out_ref[...] = jnp.dot(one_hot, tab_ref[...],
                           preferred_element_type=jnp.float32)


def extend_embedding(word_ids, tag_ids, is_in, fix_table, v_table, tag_table,
                     *, tile_rows=1024):
    """Returns (seq_len, batch, w2v_size + 9) float32, matching the PyTorch module."""
    B, S = word_ids.shape
    V, D = fix_table.shape
    TV, TD = tag_table.shape
    d_total = D + TD + 1

    # ---- fold embedding_v into embedding_fix (exact): e1[w] + v[relu(w-(V-3))] ----
    vid = jnp.maximum(jnp.arange(V, dtype=jnp.int32) - (V - 3), 0)
    adjusted_fix = fix_table.astype(jnp.float32) + v_table.astype(jnp.float32)[vid]

    # ---- build combined block-diagonal table (K_pad x N_pad), lane-dense output ----
    K = V + TV + 2
    K_pad = ((K + 255) // 256) * 256          # pad contraction dim to 256 (MXU friendly)
    N_pad = ((d_total + 127) // 128) * 128    # lane-dense output width

    combined = jnp.zeros((K_pad, N_pad), jnp.float32)
    combined = combined.at[:V, :D].set(adjusted_fix)
    combined = combined.at[V:V + TV, D:D + TD].set(tag_table.astype(jnp.float32))
    combined = combined.at[V + TV + 1, D + TD].set(1.0)   # is_in == 1 -> flag 1.0

    # ---- transpose indices to (seq, batch), flatten, and pre-apply row offsets ----
    w = jnp.transpose(word_ids).reshape(-1).astype(jnp.int32)
    t = jnp.transpose(tag_ids).reshape(-1).astype(jnp.int32) + V
    ii = jnp.transpose(is_in).reshape(-1).astype(jnp.int32) + (V + TV)

    R = S * B
    tile = min(tile_rows, pl.cdiv(R, 8) * 8)       # multiple of 8 sublanes
    R_pad = pl.cdiv(R, tile) * tile
    if R_pad != R:
        pad = R_pad - R
        # padded rows: word row 0, tag row V, is_in row V+TV -> garbage rows sliced off below
        w = jnp.pad(w, (0, pad))
        t = jnp.pad(t, (0, pad), constant_values=V)
        ii = jnp.pad(ii, (0, pad), constant_values=V + TV)
    w = w.reshape(R_pad, 1)
    t = t.reshape(R_pad, 1)
    ii = ii.reshape(R_pad, 1)

    grid = (R_pad // tile,)

    out_padded = pl.pallas_call(
        _extend_embedding_kernel,
        out_shape=jax.ShapeDtypeStruct((R_pad, N_pad), jnp.float32),
        grid=grid,
        in_specs=[
            pl.BlockSpec((tile, 1), lambda i: (i, 0)),
            pl.BlockSpec((tile, 1), lambda i: (i, 0)),
            pl.BlockSpec((tile, 1), lambda i: (i, 0)),
            pl.BlockSpec((K_pad, N_pad), lambda i: (0, 0)),   # small table, VMEM-resident
        ],
        out_specs=pl.BlockSpec((tile, N_pad), lambda i: (i, 0)),
        compiler_params=pltpu.CompilerParams(
            dimension_semantics=("parallel",)),
    )(w, t, ii, combined)

    # glue: drop row padding and lane padding, reshape to (seq, batch, D_total)
    return out_padded[:R, :d_total].reshape(S, B, d_total)


def reference(word_ids, tag_ids, is_in, fix_table, v_table, tag_table):
    V = fix_table.shape[0]
    e1 = jnp.take(fix_table, word_ids, axis=0)
    vid = jnp.maximum(word_ids - (V - 3), 0)
    e2 = jnp.take(v_table, vid, axis=0)
    word = e1 + e2
    tag = jnp.take(tag_table, tag_ids, axis=0)
    isin = is_in.astype(jnp.float32)[..., None]
    res = jnp.concatenate([word, tag, isin], axis=2)          # (B, S, Dt)
    return jnp.transpose(res, (1, 0, 2))                      # (S, B, Dt)


if __name__ == "__main__":
    B, S = 2, 8
    VOCAB, W2V = 128, 32          # pretrained embedding shape
    TAG_VOCAB, TAG_DIM = 100, 8   # fixed by the module

    key = jax.random.PRNGKey(0)
    k_fix, k_v, k_tag, k_w, k_t, k_i = jax.random.split(key, 6)

    # embedding_fix: _weight supplied, padding row NOT zeroed (matches PyTorch _weight path)
    fix_table = jax.random.normal(k_fix, (VOCAB, W2V), dtype=jnp.float32)
    # embedding_v / tag_embedding: default init with padding_idx=0 -> row 0 zeroed
    v_table = jax.random.normal(k_v, (3, W2V), dtype=jnp.float32).at[0].set(0.0)
    tag_table = jax.random.normal(k_tag, (TAG_VOCAB, TAG_DIM), dtype=jnp.float32).at[0].set(0.0)

    word_ids = jax.random.randint(k_w, (B, S), 0, VOCAB, dtype=jnp.int32)
    tag_ids = jax.random.randint(k_t, (B, S), 0, TAG_VOCAB, dtype=jnp.int32)
    is_in = jax.random.randint(k_i, (B, S), 0, 2, dtype=jnp.int32)

    out = extend_embedding(word_ids, tag_ids, is_in, fix_table, v_table, tag_table)
    out = jax.block_until_ready(out)

    ref = reference(word_ids, tag_ids, is_in, fix_table, v_table, tag_table)
    assert out.shape == (S, B, W2V + 9), out.shape
    assert jnp.allclose(out, ref, atol=1e-5, rtol=1e-5), "mismatch vs reference"

    print("KERNEL_OK")
</pallas_src>

<mosaic_0001>
module attributes {stable_mosaic.version = 11 : i64} {
  func.func @_extend_embedding_kernel(%arg0: i32, %arg1: memref<16x1xi32, #tpu.memory_space<vmem>>, %arg2: memref<16x1xi32, #tpu.memory_space<vmem>>, %arg3: memref<16x1xi32, #tpu.memory_space<vmem>>, %arg4: memref<256x128xf32, #tpu.memory_space<vmem>>, %arg5: memref<16x128xf32, #tpu.memory_space<vmem>>) attributes {dimension_semantics = [#tpu.dimension_semantics<parallel>], iteration_bounds = array<i64: 1>, scalar_prefetch = 0 : i64, scratch_operands = 0 : i64, tpu.core_type = #tpu.core_type<tc>, window_params = [{transform_indices = @transform_0, window_bounds = array<i64: 16, 1>}, {transform_indices = @transform_1, window_bounds = array<i64: 16, 1>}, {transform_indices = @transform_2, window_bounds = array<i64: 16, 1>}, {pipeline_mode = #tpu.pipeline_mode<synchronous>, transform_indices = @transform_3, window_bounds = array<i64: 256, 128>}, {transform_indices = @transform_4, window_bounds = array<i64: 16, 128>}]} {
    %c0 = arith.constant 0 : index
    %c0_0 = arith.constant 0 : index
    %0 = vector.load %arg1[%c0, %c0_0] : memref<16x1xi32, #tpu.memory_space<vmem>>, vector<16x1xi32>
    %c0_1 = arith.constant 0 : index
    %c0_2 = arith.constant 0 : index
    %1 = vector.load %arg2[%c0_1, %c0_2] : memref<16x1xi32, #tpu.memory_space<vmem>>, vector<16x1xi32>
    %c0_3 = arith.constant 0 : index
    %c0_4 = arith.constant 0 : index
    %2 = vector.load %arg3[%c0_3, %c0_4] : memref<16x1xi32, #tpu.memory_space<vmem>>, vector<16x1xi32>
    %3 = tpu.iota {dimensions = array<i32: 1>} : vector<16x256xi32>
    %4 = vector.broadcast %0 : vector<16x1xi32> to vector<16x256xi32>
    %5 = arith.cmpi eq, %3, %4 : vector<16x256xi32>
    %6 = vector.broadcast %1 : vector<16x1xi32> to vector<16x256xi32>
    %7 = arith.cmpi eq, %3, %6 : vector<16x256xi32>
    %8 = arith.ori %5, %7 : vector<16x256xi1>
    %9 = vector.broadcast %2 : vector<16x1xi32> to vector<16x256xi32>
    %10 = arith.cmpi eq, %3, %9 : vector<16x256xi32>
    %11 = arith.ori %8, %10 : vector<16x256xi1>
    %12 = arith.extui %11 : vector<16x256xi1> to vector<16x256xi32>
    %13 = arith.sitofp %12 : vector<16x256xi32> to vector<16x256xf32>
    %c0_5 = arith.constant 0 : index
    %c0_6 = arith.constant 0 : index
    %14 = vector.load %arg4[%c0_5, %c0_6] : memref<256x128xf32, #tpu.memory_space<vmem>>, vector<256x128xf32>
    %cst = arith.constant dense<0.000000e+00> : vector<16x128xf32>
    %15 = tpu.matmul %13, %14, %cst {dimension_numbers = #tpu.dot_dimension_numbers<[1], [0], [0], [1], [0, 0, 1, 1], [], []>} : vector<16x256xf32>, vector<256x128xf32>, vector<16x128xf32> -> vector<16x128xf32>
    %c0_7 = arith.constant 0 : index
    %c0_8 = arith.constant 0 : index
    %16 = vector.load %arg5[%c0_7, %c0_8] : memref<16x128xf32, #tpu.memory_space<vmem>>, vector<16x128xf32>
    tpu.vector_store %arg5[%c0_7, %c0_8], %15 {strides = array<i32>} : memref<16x128xf32, #tpu.memory_space<vmem>>, vector<16x128xf32>,
    return
  }
  func.func @transform_0(%arg0: i32) -> (i32, i32) {
    %c0_i32 = arith.constant 0 : i32
    %c0_i32_0 = arith.constant 0 : i32
    return %arg0, %c0_i32 : i32, i32
  }
  func.func @transform_1(%arg0: i32) -> (i32, i32) {
    %c0_i32 = arith.constant 0 : i32
    %c0_i32_0 = arith.constant 0 : i32
    return %arg0, %c0_i32 : i32, i32
  }
  func.func @transform_2(%arg0: i32) -> (i32, i32) {
    %c0_i32 = arith.constant 0 : i32
    %c0_i32_0 = arith.constant 0 : i32
    return %arg0, %c0_i32 : i32, i32
  }
  func.func @transform_3(%arg0: i32) -> (i32, i32) {
    %c0_i32 = arith.constant 0 : i32
    %c0_i32_0 = arith.constant 0 : i32
    %c0_i32_1 = arith.constant 0 : i32
    return %c0_i32, %c0_i32_0 : i32, i32
  }
  func.func @transform_4(%arg0: i32) -> (i32, i32) {
    %c0_i32 = arith.constant 0 : i32
    %c0_i32_0 = arith.constant 0 : i32
    return %arg0, %c0_i32 : i32, i32
  }
}

</mosaic_0001>

<bundles_post_ra>
// kernel: tpu_custom_call.1
= control target key start
LH: loop header
LB: loop body
LE: loop exit
PB: predicated region body
PF: predicated region fallthrough
CT: control target
= control target key end

     0   :  { %9 = vsyncpa [#allocation3], 0  ;;  %s404_s0 = inlined_call_operand.vmem [shape: s32[16,1], index: 0, kind: input, shape index: {}]   ;;  %s405_s1 = inlined_call_operand.vmem [shape: s32[16,1], index: 1, kind: input, shape index: {}]   ;;  %s406_s2 = inlined_call_operand.vmem [shape: s32[16,1], index: 2, kind: input, shape index: {}]   ;;  %s407_s3 = inlined_call_operand.hbm [shape: f32[256,128], index: 3, kind: input, shape index: {}]   ;;  %s408_s4 = inlined_call_operand.hbm [shape: f32[16,128], index: 4, kind: output, shape index: {}]  }
   0x1   :  { %10 = vsyncpa [#allocation4], 0  ;;  %s343_s15 = smov [#allocation2]  }
   0x2   :  { %s22_s16 = sshll.u32 %s343_s15, 4  ;;  %s23_s16 = int_to_ptr.vmem [resolvable:$true] %s22_s16 }
   0x3   :  { %s307_s17 = scalar_lea.vmem %s23_s16, 4096  ;;  %p312_p1 = scmp.lt.s32.totalorder %s23_s16, %s23_s16 }
   0x4   :  { %p308_p0 = scmp.ne.s32.totalorder %s23_s16, %s307_s17  ;;  %p313_p2 = scmp.lt.s32.totalorder %s307_s17, %s307_s17 }
   0x6   :  { %p314_p3 = por %p313_p2, %p312_p1 }
   0x8   :  { %p315_p4 = pnand %p314_p3, %p308_p0 }
   0xa   :  { %318 = shalt.err (!%p315_p4)
}
   0xb   :  { %s344_s18 = smov 128   ;;  %s345_s19 = smov 8  }
   0xc   :  { %28 = dma.hbm_to_vmem [thread:$0]  %s407_s3, 4096, %s23_s16, [#allocation3], %s344_s18, %s344_s18, %s345_s19  }
   0xd   :  { %339 = dma.done.wait [#allocation3], 4096  }
   0xe   :  { %340 = vsyncadd [#allocation3], 4294963200  ;;  %v346_v0 = vmov 0   ;;  %v34_v1 = vld [vmem:[%s405_s1] sm:$0xff]  ;;  %v35_v3 = vld [vmem:[%s405_s1 + $0x8] sm:$0xff]  ;;  %v38_v39 = vlaneseq  ;;  %v347_v48 = vmov 1.0  }
   0xf   :  { %298 = vset.pattern.permute.xlu1 %v346_v0  ;;  %297 = vset.pattern.permute.xlu0 %v346_v0  ;;  %v32_v2 = vld [vmem:[%s404_s0] sm:$0xff]  ;;  %v33_v4 = vld [vmem:[%s404_s0 + $0x8] sm:$0xff]  ;;  %v118_v5 = vld [vmem:[#allocation2 + $0xf8] sm:$0xff]  ;;  %s348_s0 = smov [#allocation5]  }
  0x10   :  { %52 = vperm.xlu1 %298, %v34_v1   ;;  %42 = vperm.xlu0 %297, %v32_v2   ;;  %v102_v6 = vld [vmem:[#allocation2 + $0x78] sm:$0xff]  ;;  %v117_v7 = vld [vmem:[#allocation2 + $0xf0] sm:$0xff]  ;;  %v116_v9 = vld [vmem:[#allocation2 + $0xe8] sm:$0xff]  ;;  %v39_v40 = vand.u32 127, %v38_v39 }
  0x11   :  { %221 = vmatprep.subr.mxu0 %v118_v5  ;;  %259 = vmatprep.subr.mxu1 %v118_v5  ;;  %v101_v8 = vld [vmem:[#allocation2 + $0x70] sm:$0xff]  ;;  %v37_v10 = vld [vmem:[%s406_s2 + $0x8] sm:$0xff]  ;;  %v36_v11 = vld [vmem:[%s406_s2] sm:$0xff]  ;;  %s201_s2 = sshll.u32 %s348_s0, 4  ;;  %s202_s2 = int_to_ptr.vmem [resolvable:$true] %s201_s2 }
  0x12   :  { %222 = vmatpush3.msra.mxu0 %v102_v6  ;;  %275 = vmatpush3.msra.mxu1 %v102_v6  ;;  %v100_v12 = vld [vmem:[#allocation2 + $0x68] sm:$0xff]  ;;  %v115_v13 = vld [vmem:[#allocation2 + $0xe0] sm:$0xff]  ;;  %v114_v15 = vld [vmem:[#allocation2 + $0xd8] sm:$0xff]  ;;  %v40_v41 = vadd.s32 128, %v39_v40  ;;  %s319_s6 = scalar_lea.vmem %s202_s2, 256  ;;  %p324_p6 = scmp.lt.s32.totalorder %s202_s2, %s202_s2 }
  0x13   :  { %223 = vmatprep.subr.mxu0 %v117_v7  ;;  %260 = vmatprep.subr.mxu1 %v117_v7  ;;  %v99_v14 = vld [vmem:[#allocation2 + $0x60] sm:$0xff]  ;;  %v98_v16 = vld [vmem:[#allocation2 + $0x58] sm:$0xff]  ;;  %v113_v17 = vld [vmem:[#allocation2 + $0xd0] sm:$0xff]  ;;  %p320_p5 = scmp.ne.s32.totalorder %s202_s2, %s319_s6  ;;  %p325_p7 = scmp.lt.s32.totalorder %s319_s6, %s319_s6 }
  0x14   :  { %55 = vperm.xlu1 %298, %v35_v3   ;;  %45 = vperm.xlu0 %297, %v33_v4   ;;  %v97_v18 = vld [vmem:[#allocation2 + $0x50] sm:$0xff]  ;;  %v112_v19 = vld [vmem:[#allocation2 + $0xc8] sm:$0xff]  ;;  %v111_v21 = vld [vmem:[#allocation2 + $0xc0] sm:$0xff] }
  0x15   :  { %224 = vmatpush3.msra.mxu0 %v101_v8  ;;  %276 = vmatpush3.msra.mxu1 %v101_v8  ;;  %v96_v20 = vld [vmem:[#allocation2 + $0x48] sm:$0xff]  ;;  %v95_v22 = vld [vmem:[#allocation2 + $0x40] sm:$0xff]  ;;  %v110_v23 = vld [vmem:[#allocation2 + $0xb8] sm:$0xff]  ;;  %p326_p8 = por %p325_p7, %p324_p6 }
  0x16   :  { %225 = vmatprep.subr.mxu0 %v116_v9  ;;  %261 = vmatprep.subr.mxu1 %v116_v9  ;;  %v94_v24 = vld [vmem:[#allocation2 + $0x38] sm:$0xff]  ;;  %v109_v25 = vld [vmem:[#allocation2 + $0xb0] sm:$0xff]  ;;  %v108_v27 = vld [vmem:[#allocation2 + $0xa8] sm:$0xff] }
  0x17   :  { %226 = vmatpush3.msra.mxu0 %v100_v12  ;;  %277 = vmatpush3.msra.mxu1 %v100_v12  ;;  %v93_v26 = vld [vmem:[#allocation2 + $0x30] sm:$0xff]  ;;  %v92_v28 = vld [vmem:[#allocation2 + $0x28] sm:$0xff]  ;;  %v107_v29 = vld [vmem:[#allocation2 + $0xa0] sm:$0xff]  ;;  %p327_p9 = pnand %p326_p8, %p320_p5 }
  0x18   :  { %69 = vperm.xlu1 %298, %v37_v10   ;;  %66 = vperm.xlu0 %297, %v36_v11   ;;  %v91_v30 = vld [vmem:[#allocation2 + $0x20] sm:$0xff]  ;;  %v106_v31 = vld [vmem:[#allocation2 + $0x98] sm:$0xff]  ;;  %v105_v33 = vld [vmem:[#allocation2 + $0x90] sm:$0xff] }
  0x19   :  { %227 = vmatprep.subr.mxu0 %v115_v13  ;;  %262 = vmatprep.subr.mxu1 %v115_v13  ;;  %v90_v32 = vld [vmem:[#allocation2 + $0x18] sm:$0xff]  ;;  %v89_v34 = vld [vmem:[#allocation2 + $0x10] sm:$0xff]  ;;  %v104_v35 = vld [vmem:[#allocation2 + $0x88] sm:$0xff] }
  0x1a   :  { %228 = vmatpush3.msra.mxu0 %v99_v14  ;;  %278 = vmatpush3.msra.mxu1 %v99_v14  ;;  %v88_v36 = vld [vmem:[#allocation2 + $0x8] sm:$0xff]  ;;  %v103_v37 = vld [vmem:[#allocation2 + $0x80] sm:$0xff] }
  0x1b   :  { %229 = vmatprep.subr.mxu0 %v114_v15  ;;  %263 = vmatprep.subr.mxu1 %v114_v15  ;;  %v87_v38 = vld [vmem:[#allocation2] sm:$0xff] }
  0x1c   :  { %230 = vmatpush3.msra.mxu0 %v98_v16  ;;  %279 = vmatpush3.msra.mxu1 %v98_v16 }
  0x1d   :  { %231 = vmatprep.subr.mxu0 %v113_v17  ;;  %264 = vmatprep.subr.mxu1 %v113_v17 }
  0x1e   :  { %232 = vmatpush3.msra.mxu0 %v97_v18  ;;  %280 = vmatpush3.msra.mxu1 %v97_v18 }
  0x1f   :  { %233 = vmatprep.subr.mxu0 %v112_v19  ;;  %265 = vmatprep.subr.mxu1 %v112_v19 }
  0x20   :  { %234 = vmatpush3.msra.mxu0 %v96_v20  ;;  %281 = vmatpush3.msra.mxu1 %v96_v20 }
  0x21   :  { %235 = vmatprep.subr.mxu0 %v111_v21  ;;  %266 = vmatprep.subr.mxu1 %v111_v21 }
  0x22   :  { %236 = vmatpush3.msra.mxu0 %v95_v22  ;;  %282 = vmatpush3.msra.mxu1 %v95_v22 }
  0x23   :  { %237 = vmatprep.subr.mxu0 %v110_v23  ;;  %267 = vmatprep.subr.mxu1 %v110_v23 }
  0x24   :  { %238 = vmatpush3.msra.mxu0 %v94_v24  ;;  %283 = vmatpush3.msra.mxu1 %v94_v24 }
  0x25   :  { %239 = vmatprep.subr.mxu0 %v109_v25  ;;  %268 = vmatprep.subr.mxu1 %v109_v25 }
  0x26   :  { %240 = vmatpush3.msra.mxu0 %v93_v26  ;;  %284 = vmatpush3.msra.mxu1 %v93_v26 }
  0x27   :  { %241 = vmatprep.subr.mxu0 %v108_v27  ;;  %269 = vmatprep.subr.mxu1 %v108_v27 }
  0x28   :  { %242 = vmatpush3.msra.mxu0 %v92_v28  ;;  %285 = vmatpush3.msra.mxu1 %v92_v28 }
  0x29   :  { %243 = vmatprep.subr.mxu0 %v107_v29  ;;  %270 = vmatprep.subr.mxu1 %v107_v29 }
  0x2a   :  { %244 = vmatpush3.msra.mxu0 %v91_v30  ;;  %286 = vmatpush3.msra.mxu1 %v91_v30 }
  0x2b   :  { %245 = vmatprep.subr.mxu0 %v106_v31  ;;  %271 = vmatprep.subr.mxu1 %v106_v31 }
  0x2c   :  { %246 = vmatpush3.msra.mxu0 %v90_v32  ;;  %287 = vmatpush3.msra.mxu1 %v90_v32 }
  0x2d   :  { %247 = vmatprep.subr.mxu0 %v105_v33  ;;  %272 = vmatprep.subr.mxu1 %v105_v33 }
  0x2e   :  { %248 = vmatpush3.msra.mxu0 %v89_v34  ;;  %288 = vmatpush3.msra.mxu1 %v89_v34 }
  0x2f   :  { %249 = vmatprep.subr.mxu0 %v104_v35  ;;  %273 = vmatprep.subr.mxu1 %v104_v35 }
  0x30   :  { %250 = vmatpush3.msra.mxu0 %v88_v36  ;;  %289 = vmatpush3.msra.mxu1 %v88_v36 }
  0x31   :  { %251 = vmatprep.subr.mxu0 %v103_v37  ;;  %274 = vmatprep.subr.mxu1 %v103_v37 }
  0x32   :  { %252 = vmatpush3.msra.mxu0 %v87_v38  ;;  %290 = vmatpush3.msra.mxu1 %v87_v38 }
  0x8b   :  { %v53_v42 = vpop.permute.xlu1 %52  ;;  %v43_v43 = vpop.permute.xlu0 %42 }
  0x8c   :  { %vm57_vm0 = vcmp.eq.s32.totalorder %v39_v40, %v53_v42  ;;  %vm47_vm1 = vcmp.eq.s32.totalorder %v39_v40, %v43_v43  ;;  %vm58_vm2 = vcmp.eq.s32.totalorder %v40_v41, %v53_v42  ;;  %vm48_vm3 = vcmp.eq.s32.totalorder %v40_v41, %v43_v43 }
  0x8d   :  { %vm61_vm8 = vmor %vm47_vm1, %vm57_vm0 }
  0x8e   :  { %vm62_vm9 = vmor %vm48_vm3, %vm58_vm2 }
  0x8f   :  { %v56_v44 = vpop.permute.xlu1 %55  ;;  %v46_v45 = vpop.permute.xlu0 %45 }
  0x90   :  { %vm59_vm4 = vcmp.eq.s32.totalorder %v39_v40, %v56_v44  ;;  %vm49_vm5 = vcmp.eq.s32.totalorder %v39_v40, %v46_v45  ;;  %vm60_vm6 = vcmp.eq.s32.totalorder %v40_v41, %v56_v44  ;;  %vm50_vm7 = vcmp.eq.s32.totalorder %v40_v41, %v46_v45 }
  0x91   :  { %vm63_vm10 = vmor %vm49_vm5, %vm59_vm4 }
  0x92   :  { %vm64_vm14 = vmor %vm50_vm7, %vm60_vm6 }
  0x93   :  { %v70_v46 = vpop.permute.xlu1 %69  ;;  %v67_v47 = vpop.permute.xlu0 %66 }
  0x94   :  { %vm73_vm11 = vcmp.eq.s32.totalorder %v39_v40, %v70_v46  ;;  %vm71_vm12 = vcmp.eq.s32.totalorder %v39_v40, %v67_v47  ;;  %vm72_vm13 = vcmp.eq.s32.totalorder %v40_v41, %v67_v47  ;;  %vm74_vm15 = vcmp.eq.s32.totalorder %v40_v41, %v70_v46 }
  0x95   :  { %vm77_vm0 = vmor %vm63_vm10, %vm73_vm11 }
  0x96   :  { %vm75_vm1 = vmor %vm61_vm8, %vm71_vm12 }
  0x97   :  { %vm76_vm2 = vmor %vm62_vm9, %vm72_vm13 }
  0x98   :  { %217 = vmatprep.mubr.msk.f32.mxu0 %vm76_vm2, %v347_v48  ;;  %vm78_vm3 = vmor %vm64_vm14, %vm74_vm15 }
  0x99   :  { %219 = vmatprep.mubr.msk.f32.mxu1 %vm78_vm3, %v347_v48  ;;  %218 = vmatmul.mubr.msk.f32.vlgmr.msra.gmra.mxu0 %vm75_vm1, %v347_v48 }
  0x9a   :  { %220 = vmatmul.mubr.msk.f32.vlgmr.msra.gmra.mxu1 %vm77_vm0, %v347_v48 }
 0x159   :  { %v253_v49 = vpop.f32.mrf.mxu0 }
 0x15a   :  { %v256_v50 = vpop.f32.mrf.mxu1 }
 0x15b   :  { %v254_v51 = vpop.f32.mrf.mxu0 }
 0x15c   :  { %v255_v52 = vadd.f32 %v254_v51, %v253_v49  ;;  %v257_v53 = vpop.f32.mrf.mxu1 }
 0x15d   :  { %v258_v54 = vadd.f32 %v257_v53, %v256_v50 }
 0x15e   :  { %194 = vst [vmem:[#allocation5] sm:$0xff] %v255_v52 }
 0x15f   :  { %195 = vst [vmem:[#allocation5 + $0x8] sm:$0xff] %v258_v54 }
 0x160   :  { %330 = shalt.err (!%p327_p9)
}
 0x161   :  { %207 = dma.vmem_to_hbm [thread:$0]  %s202_s2, 256, %s408_s4, [#allocation4], %s344_s18, %s344_s18, %s345_s19  }
 0x162   :  { %341 = dma.done.wait [#allocation4], 256  }
 0x163   :  { %342 = vsyncadd [#allocation4], 4294967040 }
 0x164   :  { %211 = vsyncpa [#allocation3], 1 }
 0x165   :  { %212 = vsyncpa [#allocation4], 1 }

</bundles_post_ra>
